<compile_context>
chip_gen: v5e
topology: v5e:2x2
jax: 0.10.0
libtpu: 0.0.40
codegen_flags: <defaults>
</compile_context>

<pallas_src>
import jax
import jax.numpy as jnp
from jax.experimental import pallas as pl
from jax.experimental.pallas import tpu as pltpu

PAD_ID = 0
_NEG_BIG = -1e30  # bias for padded vocab columns -> exp underflows to 0


def _round_up(x, m):
    return (x + m - 1) // m * m


def _output_ce_kernel(h_ref, w_ref, b_ref, lbl_ref, nll_ref, valid_ref,
                      m_sc, l_sc, g_sc):
    """Fused output-projection + online-softmax cross-entropy.

    Grid = (row_blocks, vocab_blocks); vocab axis is the reduction
    ("arbitrary", innermost).  Running max / sum-exp / label-logit live in
    VMEM scratch, finalized on the last vocab step.

    h_ref:   (TM, H)  bf16    hidden-state tile
    w_ref:   (H,  TV) bf16    output projection weight tile
    b_ref:   (1,  TV) f32     output projection bias tile
    lbl_ref: (TM, 1)  int32   labels for this row tile
    nll_ref: (TM, 1)  f32     per-row NLL (0 for pad rows)
    valid_ref: (TM,1) f32     1.0 for non-pad rows, 0.0 for pad
    """
    vi = pl.program_id(1)
    tv = w_ref.shape[1]

    @pl.when(vi == 0)
    def _():
        m_sc[...] = jnp.full_like(m_sc, -jnp.inf)
        l_sc[...] = jnp.zeros_like(l_sc)
        g_sc[...] = jnp.zeros_like(g_sc)

    # MXU matmul: bf16 inputs, fp32 accumulation.
    logits = jnp.dot(h_ref[...], w_ref[...],
                     preferred_element_type=jnp.float32) + b_ref[...]

    labels = lbl_ref[...]                                        # (TM, 1) i32
    col = jax.lax.broadcasted_iota(jnp.int32, logits.shape, 1) + vi * tv
    # Label logit is purely additive across vocab tiles (exactly one tile
    # contains the label column), so no online rescale is needed for it.
    g_sc[...] += jnp.sum(jnp.where(col == labels, logits, 0.0),
                         axis=-1, keepdims=True)

    # Online (flash-style) log-sum-exp update.
    m_prev = m_sc[...]
    m_new = jnp.maximum(m_prev, jnp.max(logits, axis=-1, keepdims=True))
    l_sc[...] = (l_sc[...] * jnp.exp(m_prev - m_new)
                 + jnp.sum(jnp.exp(logits - m_new), axis=-1, keepdims=True))
    m_sc[...] = m_new

    @pl.when(vi == pl.num_programs(1) - 1)
    def _():
        lse = m_sc[...] + jnp.log(l_sc[...])
        valid = (labels != PAD_ID).astype(jnp.float32)
        nll_ref[...] = (lse - g_sc[...]) * valid
        valid_ref[...] = valid


def fused_output_ce(hidden, w_out, b_out, labels, *,
                    tm_target=256, tv_target=2048):
    """hidden: [N, H], w_out: [H, V], b_out: [V], labels: [N] int.

    Returns (nll [N,1] f32, valid [N,1] f32).
    """
    N, H = hidden.shape
    V = w_out.shape[1]

    # Row tile: as large as practical, multiple of 8 (fp32 sublane); pad N.
    tm = min(tm_target, _round_up(N, 8))
    N_pad = _round_up(N, tm)

    # Vocab tile: full V when it already fits; otherwise 128-aligned tiles.
    if V <= tv_target:
        tv, V_pad = V, V
    else:
        tv = tv_target
        V_pad = _round_up(V, tv)

    h = hidden.astype(jnp.bfloat16)
    w = w_out.astype(jnp.bfloat16)
    b = b_out.reshape(1, V).astype(jnp.float32)
    lbl = labels.reshape(N, 1).astype(jnp.int32)

    if N_pad != N:
        h = jnp.pad(h, ((0, N_pad - N), (0, 0)))
        lbl = jnp.pad(lbl, ((0, N_pad - N), (0, 0)), constant_values=PAD_ID)
    if V_pad != V:
        w = jnp.pad(w, ((0, 0), (0, V_pad - V)))
        b = jnp.pad(b, ((0, 0), (0, V_pad - V)), constant_values=_NEG_BIG)

    row_blocks = N_pad // tm
    vocab_blocks = V_pad // tv

    # VMEM budget: double-buffered inputs + fp32 logits tile, with headroom.
    budget = (2 * tm * H * 2          # hidden bf16 (double-buffered)
              + 2 * H * tv * 2        # weight bf16 (double-buffered)
              + 2 * tv * 4            # bias f32
              + 6 * tm * 4            # labels + 2 outputs (x2 buffers)
              + 3 * tm * 4            # scratch
              + 2 * tm * tv * 4)      # logits + temporaries
    vmem_limit = min(max(int(budget * 1.5) + (4 << 20), 16 << 20), 64 << 20)

    nll, valid = pl.pallas_call(
        _output_ce_kernel,
        out_shape=(
            jax.ShapeDtypeStruct((N_pad, 1), jnp.float32),
            jax.ShapeDtypeStruct((N_pad, 1), jnp.float32),
        ),
        grid_spec=pltpu.PrefetchScalarGridSpec(
            num_scalar_prefetch=0,
            grid=(row_blocks, vocab_blocks),
            in_specs=[
                pl.BlockSpec((tm, H), lambda i, vi: (i, 0)),   # hidden tile
                pl.BlockSpec((H, tv), lambda i, vi: (0, vi)),  # weight tile
                pl.BlockSpec((1, tv), lambda i, vi: (0, vi)),  # bias tile
                pl.BlockSpec((tm, 1), lambda i, vi: (i, 0)),   # labels tile
            ],
            out_specs=[
                pl.BlockSpec((tm, 1), lambda i, vi: (i, 0)),
                pl.BlockSpec((tm, 1), lambda i, vi: (i, 0)),
            ],
            scratch_shapes=[
                pltpu.VMEM((tm, 1), jnp.float32),   # running max
                pltpu.VMEM((tm, 1), jnp.float32),   # running sum-exp
                pltpu.VMEM((tm, 1), jnp.float32),   # label logit
            ],
        ),
        compiler_params=pltpu.CompilerParams(
            dimension_semantics=("parallel", "arbitrary"),
            vmem_limit_bytes=vmem_limit),
    )(h, w, b, lbl)

    return nll[:N], valid[:N]


class SockeyeLikeModel:
    """Tiny encoder/decoder stand-in: embed source, mask+mean-pool by length,
    embed target, add pooled source context, project to vocab (in the kernel)."""

    def __init__(self, vocab_size, hidden, key):
        k1, k2, k3 = jax.random.split(key, 3)
        scale = 0.02
        self.src_emb = scale * jax.random.normal(k1, (vocab_size, hidden), jnp.float32)
        self.tgt_emb = scale * jax.random.normal(k2, (vocab_size, hidden), jnp.float32)
        self.w_out = scale * jax.random.normal(k3, (hidden, vocab_size), jnp.float32)
        self.b_out = jnp.zeros((vocab_size,), jnp.float32)

    def hidden_states(self, source, source_length, target, target_length):
        B, Ss = source.shape
        _, St = target.shape
        src_e = self.src_emb[source]                               # [B, Ss, H]
        pos = jnp.arange(Ss)[None, :]
        mask = (pos < source_length[:, None]).astype(jnp.float32)  # [B, Ss]
        denom = jnp.maximum(source_length[:, None].astype(jnp.float32), 1.0)
        pooled = (src_e * mask[..., None]).sum(axis=1) / denom     # [B, H]
        tgt_e = self.tgt_emb[target]                               # [B, St, H]
        hidden = tgt_e + pooled[:, None, :]                        # [B, St, H]
        return hidden


class CrossEntropyLoss:
    """Sockeye-style CE loss: (mean CE over non-pad tokens, num_samples)."""

    def __init__(self, model):
        self.model = model

    def __call__(self, hidden_flat, labels_flat):
        nll, valid = fused_output_ce(
            hidden_flat, self.model.w_out, self.model.b_out, labels_flat)
        num_valid = valid.sum()
        loss_value = nll.sum() / jnp.maximum(num_valid, 1.0)
        return loss_value, num_valid


class ModelWithLoss:
    """JAX/Pallas port of the PyTorch ModelWithLoss wrapper."""

    def __init__(self, model, losses):
        self.model = model
        self.losses = losses

    def __call__(self, source, source_length, target, target_length, labels):
        hidden = self.model.hidden_states(source, source_length, target, target_length)
        B, St, H = hidden.shape
        hidden_flat = hidden.reshape(B * St, H)
        labels_flat = labels["target_label"].reshape(B * St)

        loss_outputs = [loss_fn(hidden_flat, labels_flat) for loss_fn in self.losses]
        loss_values, num_samples = zip(*loss_outputs)
        sum_losses = sum(loss_values) if len(loss_values) > 1 else loss_values[0]
        return sum_losses, list(loss_values), list(num_samples)


if __name__ == "__main__":
    # small shapes: batch=2, src_seq=8, tgt_seq=8, hidden=32, vocab=32
    B, Ss, St, H, V = 2, 8, 8, 32, 32

    key = jax.random.PRNGKey(0)
    k_src, k_tgt, k_lbl, k_param = jax.random.split(key, 4)

    source = jax.random.randint(k_src, (B, Ss), 1, V, dtype=jnp.int32)
    target = jax.random.randint(k_tgt, (B, St), 1, V, dtype=jnp.int32)
    source_length = jnp.array([Ss, Ss - 3], dtype=jnp.int32)
    target_length = jnp.array([St, St - 2], dtype=jnp.int32)

    # labels: pad (id 0) beyond each target length, real tokens elsewhere
    raw_labels = jax.random.randint(k_lbl, (B, St), 1, V, dtype=jnp.int32)
    tgt_pos = jnp.arange(St)[None, :]
    label_mask = (tgt_pos < target_length[:, None]).astype(jnp.int32)
    labels = {"target_label": raw_labels * label_mask}

    model = SockeyeLikeModel(V, H, k_param)
    module = ModelWithLoss(model, losses=[CrossEntropyLoss(model)])

    sum_losses, loss_values, num_samples = module(
        source, source_length, target, target_length, labels)

    jax.block_until_ready(sum_losses)
    jax.block_until_ready(loss_values[0])
    jax.block_until_ready(num_samples[0])

    print("KERNEL_OK")
</pallas_src>

<mosaic_0001>
module attributes {stable_mosaic.version = 11 : i64} {
  func.func @_output_ce_kernel(%arg0: i32, %arg1: i32, %arg2: memref<16x32xbf16, #tpu.memory_space<vmem>>, %arg3: memref<32x32xbf16, #tpu.memory_space<vmem>>, %arg4: memref<1x32xf32, #tpu.memory_space<vmem>>, %arg5: memref<16x1xi32, #tpu.memory_space<vmem>>, %arg6: memref<16x1xf32, #tpu.memory_space<vmem>>, %arg7: memref<16x1xf32, #tpu.memory_space<vmem>>, %arg8: memref<16x1xf32, #tpu.memory_space<vmem>>, %arg9: memref<16x1xf32, #tpu.memory_space<vmem>>, %arg10: memref<16x1xf32, #tpu.memory_space<vmem>>) attributes {dimension_semantics = [#tpu.dimension_semantics<parallel>, #tpu.dimension_semantics<arbitrary>], iteration_bounds = array<i64: 1, 1>, scalar_prefetch = 0 : i64, scratch_operands = 3 : i64, tpu.core_type = #tpu.core_type<tc>, window_params = [{transform_indices = @transform_0, window_bounds = array<i64: 16, 32>}, {transform_indices = @transform_1, window_bounds = array<i64: 32, 32>}, {transform_indices = @transform_2, window_bounds = array<i64: 1, 32>}, {transform_indices = @transform_3, window_bounds = array<i64: 16, 1>}, {transform_indices = @transform_4, window_bounds = array<i64: 16, 1>}, {transform_indices = @transform_5, window_bounds = array<i64: 16, 1>}]} {
    %c0_i32 = arith.constant 0 : i32
    %0 = arith.cmpi eq, %arg1, %c0_i32 : i32
    %1 = arith.extui %0 : i1 to i32
    %c0_i32_0 = arith.constant 0 : i32
    %2 = arith.cmpi ne, %1, %c0_i32_0 : i32
    scf.if %2 {
      %cst_26 = arith.constant 0xFF800000 : f32
      %42 = vector.broadcast %cst_26 : f32 to vector<16x1xf32>
      %c0_27 = arith.constant 0 : index
      %c0_28 = arith.constant 0 : index
      %43 = vector.load %arg8[%c0_27, %c0_28] : memref<16x1xf32, #tpu.memory_space<vmem>>, vector<16x1xf32>
      tpu.vector_store %arg8[%c0_27, %c0_28], %42 {strides = array<i32>} : memref<16x1xf32, #tpu.memory_space<vmem>>, vector<16x1xf32>,
      %cst_29 = arith.constant 0.000000e+00 : f32
      %44 = vector.broadcast %cst_29 : f32 to vector<16x1xf32>
      %c0_30 = arith.constant 0 : index
      %c0_31 = arith.constant 0 : index
      %45 = vector.load %arg9[%c0_30, %c0_31] : memref<16x1xf32, #tpu.memory_space<vmem>>, vector<16x1xf32>
      tpu.vector_store %arg9[%c0_30, %c0_31], %44 {strides = array<i32>} : memref<16x1xf32, #tpu.memory_space<vmem>>, vector<16x1xf32>,
      %cst_32 = arith.constant 0.000000e+00 : f32
      %46 = vector.broadcast %cst_32 : f32 to vector<16x1xf32>
      %c0_33 = arith.constant 0 : index
      %c0_34 = arith.constant 0 : index
      %47 = vector.load %arg10[%c0_33, %c0_34] : memref<16x1xf32, #tpu.memory_space<vmem>>, vector<16x1xf32>
      tpu.vector_store %arg10[%c0_33, %c0_34], %46 {strides = array<i32>} : memref<16x1xf32, #tpu.memory_space<vmem>>, vector<16x1xf32>,
    } else {
    }
    %c0 = arith.constant 0 : index
    %c0_1 = arith.constant 0 : index
    %3 = vector.load %arg2[%c0, %c0_1] : memref<16x32xbf16, #tpu.memory_space<vmem>>, vector<16x32xbf16>
    %c0_2 = arith.constant 0 : index
    %c0_3 = arith.constant 0 : index
    %4 = vector.load %arg3[%c0_2, %c0_3] : memref<32x32xbf16, #tpu.memory_space<vmem>>, vector<32x32xbf16>
    %cst = arith.constant dense<0.000000e+00> : vector<16x32xf32>
    %5 = tpu.matmul %3, %4, %cst {dimension_numbers = #tpu.dot_dimension_numbers<[1], [0], [0], [1], [0, 0, 1, 1], [], []>} : vector<16x32xbf16>, vector<32x32xbf16>, vector<16x32xf32> -> vector<16x32xf32>
    %c0_4 = arith.constant 0 : index
    %c0_5 = arith.constant 0 : index
    %6 = vector.load %arg4[%c0_4, %c0_5] : memref<1x32xf32, #tpu.memory_space<vmem>>, vector<1x32xf32>
    %7 = vector.broadcast %6 : vector<1x32xf32> to vector<16x32xf32>
    %8 = arith.addf %5, %7 : vector<16x32xf32>
    %c0_6 = arith.constant 0 : index
    %c0_7 = arith.constant 0 : index
    %9 = vector.load %arg5[%c0_6, %c0_7] : memref<16x1xi32, #tpu.memory_space<vmem>>, vector<16x1xi32>
    %10 = tpu.iota {dimensions = array<i32: 1>} : vector<16x32xi32>
    %c32_i32 = arith.constant 32 : i32
    %11 = arith.muli %arg1, %c32_i32 : i32
    %12 = vector.broadcast %11 : i32 to vector<16x32xi32>
    %13 = arith.addi %10, %12 : vector<16x32xi32>
    %c0_8 = arith.constant 0 : index
    %c0_9 = arith.constant 0 : index
    %14 = vector.load %arg10[%c0_8, %c0_9] : memref<16x1xf32, #tpu.memory_space<vmem>>, vector<16x1xf32>
    %15 = vector.broadcast %9 : vector<16x1xi32> to vector<16x32xi32>
    %16 = arith.cmpi eq, %13, %15 : vector<16x32xi32>
    %cst_10 = arith.constant 0.000000e+00 : f32
    %17 = vector.broadcast %cst_10 : f32 to vector<16x32xf32>
    %18 = arith.select %16, %8, %17 : vector<16x32xi1>, vector<16x32xf32>
    %cst_11 = arith.constant dense<0.000000e+00> : vector<16xf32>
    %19 = vector.multi_reduction <add>, %18, %cst_11 [1] : vector<16x32xf32> to vector<16xf32>
    %20 = vector.shape_cast %19 : vector<16xf32> to vector<16x1xf32>
    %21 = arith.addf %14, %20 : vector<16x1xf32>
    %c0_12 = arith.constant 0 : index
    %c0_13 = arith.constant 0 : index
    %22 = vector.load %arg10[%c0_12, %c0_13] : memref<16x1xf32, #tpu.memory_space<vmem>>, vector<16x1xf32>
    tpu.vector_store %arg10[%c0_12, %c0_13], %21 {strides = array<i32>} : memref<16x1xf32, #tpu.memory_space<vmem>>, vector<16x1xf32>,
    %c0_14 = arith.constant 0 : index
    %c0_15 = arith.constant 0 : index
    %23 = vector.load %arg8[%c0_14, %c0_15] : memref<16x1xf32, #tpu.memory_space<vmem>>, vector<16x1xf32>
    %cst_16 = arith.constant dense<0xFF800000> : vector<16xf32>
    %24 = vector.multi_reduction <maximumf>, %8, %cst_16 [1] : vector<16x32xf32> to vector<16xf32>
    %25 = vector.shape_cast %24 : vector<16xf32> to vector<16x1xf32>
    %26 = arith.maximumf %23, %25 : vector<16x1xf32>
    %c0_17 = arith.constant 0 : index
    %c0_18 = arith.constant 0 : index
    %27 = vector.load %arg9[%c0_17, %c0_18] : memref<16x1xf32, #tpu.memory_space<vmem>>, vector<16x1xf32>
    %28 = arith.subf %23, %26 : vector<16x1xf32>
    %29 = math.exp %28 : vector<16x1xf32>
    %30 = arith.mulf %27, %29 : vector<16x1xf32>
    %31 = vector.broadcast %26 : vector<16x1xf32> to vector<16x32xf32>
    %32 = arith.subf %8, %31 : vector<16x32xf32>
    %33 = math.exp %32 : vector<16x32xf32>
    %cst_19 = arith.constant dense<0.000000e+00> : vector<16xf32>
    %34 = vector.multi_reduction <add>, %33, %cst_19 [1] : vector<16x32xf32> to vector<16xf32>
    %35 = vector.shape_cast %34 : vector<16xf32> to vector<16x1xf32>
    %36 = arith.addf %30, %35 : vector<16x1xf32>
    %c0_20 = arith.constant 0 : index
    %c0_21 = arith.constant 0 : index
    %37 = vector.load %arg9[%c0_20, %c0_21] : memref<16x1xf32, #tpu.memory_space<vmem>>, vector<16x1xf32>
    tpu.vector_store %arg9[%c0_20, %c0_21], %36 {strides = array<i32>} : memref<16x1xf32, #tpu.memory_space<vmem>>, vector<16x1xf32>,
    %c0_22 = arith.constant 0 : index
    %c0_23 = arith.constant 0 : index
    %38 = vector.load %arg8[%c0_22, %c0_23] : memref<16x1xf32, #tpu.memory_space<vmem>>, vector<16x1xf32>
    tpu.vector_store %arg8[%c0_22, %c0_23], %26 {strides = array<i32>} : memref<16x1xf32, #tpu.memory_space<vmem>>, vector<16x1xf32>,
    %c0_i32_24 = arith.constant 0 : i32
    %39 = arith.cmpi eq, %arg1, %c0_i32_24 : i32
    %40 = arith.extui %39 : i1 to i32
    %c0_i32_25 = arith.constant 0 : i32
    %41 = arith.cmpi ne, %40, %c0_i32_25 : i32
    scf.if %41 {
      %c0_26 = arith.constant 0 : index
      %c0_27 = arith.constant 0 : index
      %42 = vector.load %arg8[%c0_26, %c0_27] : memref<16x1xf32, #tpu.memory_space<vmem>>, vector<16x1xf32>
      %c0_28 = arith.constant 0 : index
      %c0_29 = arith.constant 0 : index
      %43 = vector.load %arg9[%c0_28, %c0_29] : memref<16x1xf32, #tpu.memory_space<vmem>>, vector<16x1xf32>
      %44 = math.log %43 : vector<16x1xf32>
      %45 = arith.addf %42, %44 : vector<16x1xf32>
      %c0_i32_30 = arith.constant 0 : i32
      %46 = vector.broadcast %c0_i32_30 : i32 to vector<16x1xi32>
      %47 = arith.cmpi ne, %9, %46 : vector<16x1xi32>
      %48 = arith.extui %47 : vector<16x1xi1> to vector<16x1xi32>
      %49 = arith.sitofp %48 : vector<16x1xi32> to vector<16x1xf32>
      %c0_31 = arith.constant 0 : index
      %c0_32 = arith.constant 0 : index
      %50 = vector.load %arg10[%c0_31, %c0_32] : memref<16x1xf32, #tpu.memory_space<vmem>>, vector<16x1xf32>
      %51 = arith.subf %45, %50 : vector<16x1xf32>
      %52 = arith.mulf %51, %49 : vector<16x1xf32>
      %c0_33 = arith.constant 0 : index
      %c0_34 = arith.constant 0 : index
      %53 = vector.load %arg6[%c0_33, %c0_34] : memref<16x1xf32, #tpu.memory_space<vmem>>, vector<16x1xf32>
      tpu.vector_store %arg6[%c0_33, %c0_34], %52 {strides = array<i32>} : memref<16x1xf32, #tpu.memory_space<vmem>>, vector<16x1xf32>,
      %c0_35 = arith.constant 0 : index
      %c0_36 = arith.constant 0 : index
      %54 = vector.load %arg7[%c0_35, %c0_36] : memref<16x1xf32, #tpu.memory_space<vmem>>, vector<16x1xf32>
      tpu.vector_store %arg7[%c0_35, %c0_36], %49 {strides = array<i32>} : memref<16x1xf32, #tpu.memory_space<vmem>>, vector<16x1xf32>,
    } else {
    }
    return
  }
  func.func @transform_0(%arg0: i32, %arg1: i32) -> (i32, i32) {
    %c0_i32 = arith.constant 0 : i32
    %c0_i32_0 = arith.constant 0 : i32
    return %arg0, %c0_i32 : i32, i32
  }
  func.func @transform_1(%arg0: i32, %arg1: i32) -> (i32, i32) {
    %c0_i32 = arith.constant 0 : i32
    %c0_i32_0 = arith.constant 0 : i32
    return %c0_i32, %arg1 : i32, i32
  }
  func.func @transform_2(%arg0: i32, %arg1: i32) -> (i32, i32) {
    %c0_i32 = arith.constant 0 : i32
    %c0_i32_0 = arith.constant 0 : i32
    return %c0_i32, %arg1 : i32, i32
  }
  func.func @transform_3(%arg0: i32, %arg1: i32) -> (i32, i32) {
    %c0_i32 = arith.constant 0 : i32
    %c0_i32_0 = arith.constant 0 : i32
    return %arg0, %c0_i32 : i32, i32
  }
  func.func @transform_4(%arg0: i32, %arg1: i32) -> (i32, i32) {
    %c0_i32 = arith.constant 0 : i32
    %c0_i32_0 = arith.constant 0 : i32
    return %arg0, %c0_i32 : i32, i32
  }
  func.func @transform_5(%arg0: i32, %arg1: i32) -> (i32, i32) {
    %c0_i32 = arith.constant 0 : i32
    %c0_i32_0 = arith.constant 0 : i32
    return %arg0, %c0_i32 : i32, i32
  }
}

</mosaic_0001>

<bundles_post_ra>
// kernel: tpu_custom_call.1
= control target key start
LH: loop header
LB: loop body
LE: loop exit
PB: predicated region body
PF: predicated region fallthrough
CT: control target
= control target key end

     0   :  { %11 = vsyncpa [#allocation6], 0  ;;  %s274_s21 = smov [#allocation5]   ;;  %s275_s23 = smov 64   ;;  %s371_s0 = inlined_call_operand.hbm [shape: bf16[16,32], index: 0, kind: input, shape index: {}]   ;;  %s372_s1 = inlined_call_operand.vmem [shape: bf16[32,32], index: 1, kind: input, shape index: {}]   ;;  %s373_s2 = inlined_call_operand.vmem [shape: f32[1,32], index: 2, kind: input, shape index: {}]   ;;  %s374_s3 = inlined_call_operand.vmem [shape: s32[16,1], index: 3, kind: input, shape index: {}]   ;;  %s375_s4 = inlined_call_operand.vmem [shape: f32[16,1], index: 4, kind: output, shape index: {0}]   ;;  %s376_s5 = inlined_call_operand.vmem [shape: f32[16,1], index: 5, kind: output, shape index: {1}]  }
   0x1   :  { %s16_s20 = sshll.u32 %s371_s0, 4  ;;  %s18_s22 = sshll.u32 %s274_s21, 4  ;;  %s17_s20 = int_to_ptr.hbm [resolvable:$true] %s16_s20  ;;  %s19_s22 = int_to_ptr.vmem [resolvable:$true] %s18_s22 }
   0x2   :  { %s276_s24 = smov 4  }
   0x3   :  { %24 = dma.hbm_to_vmem [thread:$0]  %s17_s20, 128, %s19_s22, [#allocation6], %s275_s23, %s275_s23, %s276_s24  }
   0x4   :  { %272 = dma.done.wait [#allocation6], 128  }
   0x5   :  { %273 = vsyncadd [#allocation6], 4294967168  ;;  %vm40_vm0 = vcmask 7168   ;;  %v277_v0 = vmov 0   ;;  %v278_v1 = vmov 0.0   ;;  %v225_v2 = vld [vmem:[%s372_s1 + $0x8] sm:$0xff]  ;;  %v94_v10 = vlaneseq }
   0x6   :  { %233 = vset.pattern.permute.xlu2 %v277_v0  ;;  %43 = vst.msk [vmem:[#allocation3] sm:$0xff] %vm40_vm0, %v278_v1  ;;  %232 = vset.pattern.permute.xlu1 %v277_v0  ;;  %v92_v3 = vld [vmem:[%s374_s3] sm:$0xff]  ;;  %v93_v4 = vld [vmem:[%s374_s3 + $0x8] sm:$0xff]  ;;  %v223_v8 = vld [vmem:[#allocation5] sm:$0xff]  ;;  %vm74_vm3 = vcmask 261120   ;;  %v279_v9 = vmov -inf  }
   0x7   :  { %44 = vst.msk [vmem:[#allocation3 + $0x8] sm:$0xff] %vm40_vm0, %v278_v1  ;;  %234 = vset.pattern.permute.xlu0 %v277_v0  ;;  %84 = vmatpush.bf16.msra.mxu0 %v225_v2  ;;  %v224_v5 = vld [vmem:[%s372_s1] sm:$0xff]  ;;  %vm183_vm1 = vcmp.ne.s32.totalorder %v92_v3, 0  ;;  %vm184_vm2 = vcmp.ne.s32.totalorder %v93_v4, 0  ;;  %v95_v11 = vand.u32 127, %v94_v10 }
   0x8   :  { %45 = vst.msk [vmem:[#allocation4] sm:$0xff] %vm40_vm0, %v278_v1  ;;  %102 = vperm.xlu2 %233, %v92_v3   ;;  %v329_v6 = vsel %vm183_vm1, 1.0, %v278_v1  ;;  %v336_v7 = vsel %vm184_vm2, 1.0, %v278_v1  ;;  %v235_v12 = vld [vmem:[%s373_s2] ss:$0 sm:$0xff] }
   0x9   :  { %46 = vst.msk [vmem:[#allocation4 + $0x8] sm:$0xff] %vm40_vm0, %v278_v1 }
   0xa   :  { %197 = vst.msk [vmem:[%s376_s5] sm:$0xff] %vm40_vm0, %v329_v6 }
   0xb   :  { %198 = vst.msk [vmem:[%s376_s5 + $0x8] sm:$0xff] %vm40_vm0, %v336_v7  ;;  %85 = vmatpush.bf16.msra.mxu0 %v224_v5 }
   0xc   :  { %41 = vst.msk [vmem:[#allocation2] sm:$0xff] %vm40_vm0, %v279_v9 }
   0xd   :  { %42 = vst.msk [vmem:[#allocation2 + $0x8] sm:$0xff] %vm40_vm0, %v279_v9  ;;  %v132_v49 = vld [vmem:[#allocation3] sm:$0xff] }
   0xe   :  { %220 = vmatmul.msk.bf16.vlgmr.msra.gmra.mxu0 %vm74_vm3, %v223_v8  ;;  %v133_v54 = vld [vmem:[#allocation3 + $0x8] sm:$0xff] }
   0xf   :  { %v99_v24 = vld [vmem:[#allocation4] sm:$0xff] }
  0x10   :  { %105 = vperm.xlu2 %233, %v93_v4   ;;  %v100_v55 = vld [vmem:[#allocation4 + $0x8] sm:$0xff] }
  0x13   :  { %v122_v23 = vld [vmem:[#allocation2] sm:$0xff] }
  0x14   :  { %v123_v30 = vld [vmem:[#allocation2 + $0x8] sm:$0xff] }
  0x62   :  { %v103_v13 = vpop.permute.xlu2 %102 }
  0x63   :  { %vm107_vm4 = vcmp.eq.s32.totalorder %v95_v11, %v103_v13 }
  0x6a   :  { %v106_v22 = vpop.permute.xlu2 %105 }
  0x6b   :  { %vm108_vm5 = vcmp.eq.s32.totalorder %v95_v11, %v106_v22 }
  0x8b   :  { %v87_v14 = vpop.f32.mrf.mxu0 }
  0x8c   :  { %v88_v15 = vadd.f32 %v235_v12, %v87_v14 }
  0x8e   :  { %v124_v16 = vsel %vm74_vm3, %v88_v15, -inf  ;;  %v109_v17 = vsel %vm107_vm4, %v88_v15, 0.0 }
  0x8f   :  { %125 = vmax.xlane.f32.xlu0 %v124_v16  ;;  %v111_v18 = vsel %vm74_vm3, %v109_v17, 0.0 }
  0x90   :  { %112 = vadd.xlane.f32.xlu2 %v111_v18 }
  0x93   :  { %v89_v19 = vpop.f32.mrf.mxu0 }
  0x94   :  { %v90_v20 = vadd.f32 %v235_v12, %v89_v19 }
  0x96   :  { %v127_v21 = vsel %vm74_vm3, %v90_v20, -inf  ;;  %v110_v42 = vsel %vm108_vm5, %v90_v20, 0.0 }
  0x97   :  { %128 = vmax.xlane.f32.xlu0 %v127_v21  ;;  %v114_v44 = vsel %vm74_vm3, %v110_v42, 0.0 }
 0x102   :  { %v126_v25 = vpop.xlane.xlu0 %125 }
 0x103   :  { %v130_v26 = vmax.f32 %v122_v23, %v126_v25  ;;  %v113_v27 = vpop.xlane.xlu2 %112 }
 0x104   :  { %v117_v28 = vadd.f32 %v113_v27, %v99_v24 }
 0x105   :  { %v134_v29 = vsub.f32 %v122_v23, %v130_v26  ;;  %168 = vst.msk [vmem:[#allocation2] sm:$0xff] %vm40_vm0, %v130_v26  ;;  %144 = vperm.xlu1 %232, %v130_v26  }
 0x106   :  { %120 = vst.msk [vmem:[#allocation4] sm:$0xff] %vm40_vm0, %v117_v28 }
 0x107   :  { %v136_v46 = vmul.f32 1.442695, %v134_v29 }
 0x10a   :  { %v129_v31 = vpop.xlane.xlu0 %128 }
 0x10b   :  { %v131_v32 = vmax.f32 %v123_v30, %v129_v31 }
 0x10c   :  { %v173_v0 = vld [vmem:[#allocation2] sm:$0xff] }
 0x10d   :  { %v135_v33 = vsub.f32 %v123_v30, %v131_v32  ;;  %169 = vst.msk [vmem:[#allocation2 + $0x8] sm:$0xff] %vm40_vm0, %v131_v32  ;;  %149 = vperm.xlu1 %232, %v131_v32   ;;  %v189_v3 = vld [vmem:[#allocation4] sm:$0xff] }
 0x10f   :  { %v138_v47 = vmul.f32 1.442695, %v135_v33 }
 0x114   :  { %v174_v10 = vld [vmem:[#allocation2 + $0x8] sm:$0xff] }
 0x177   :  { %v145_v34 = vpop.permute.xlu1 %144 }
 0x178   :  { %v152_v35 = vsub.f32 %v88_v15, %v145_v34 }
 0x17a   :  { %v154_v36 = vmul.f32 1.442695, %v152_v35 }
 0x17c   :  { %236 = vpow2.f32 %v154_v36 }
 0x17f   :  { %v150_v37 = vpop.permute.xlu1 %149 }
 0x180   :  { %v153_v38 = vsub.f32 %v90_v20, %v150_v37 }
 0x182   :  { %v237_v39 = vpop.eup %236  ;;  %v156_v40 = vmul.f32 1.442695, %v153_v38 }
 0x183   :  { %v158_v41 = vsel %vm74_vm3, %v237_v39, 0.0 }
 0x184   :  { %238 = vpow2.f32 %v156_v40  ;;  %159 = vadd.xlane.f32.xlu0 %v158_v41 }
 0x185   :  { %240 = vpow2.f32 %v136_v46 }
 0x186   :  { %242 = vpow2.f32 %v138_v47 }
 0x18a   :  { %v239_v43 = vpop.eup %238 }
 0x18b   :  { %v161_v45 = vsel %vm74_vm3, %v239_v43, 0.0  ;;  %v241_v48 = vpop.eup %240 }
 0x18c   :  { %115 = vadd.xlane.f32.xlu0 %v114_v44  ;;  %162 = vadd.xlane.f32.xlu1 %v161_v45  ;;  %v140_v50 = vmul.f32 %v241_v48, %v132_v49  ;;  %v243_v53 = vpop.eup %242 }
 0x18d   :  { %v141_v56 = vmul.f32 %v243_v53, %v133_v54 }
 0x1f7   :  { %v160_v51 = vpop.xlane.xlu0 %159 }
 0x1f8   :  { %v164_v52 = vadd.f32 %v160_v51, %v140_v50 }
 0x1fa   :  { %166 = vst.msk [vmem:[#allocation3] sm:$0xff] %vm40_vm0, %v164_v52 }
 0x1ff   :  { %v116_v57 = vpop.xlane.xlu0 %115  ;;  %v163_v58 = vpop.xlane.xlu1 %162 }
 0x200   :  { %v118_v59 = vadd.f32 %v116_v57, %v100_v55  ;;  %v165_v60 = vadd.f32 %v163_v58, %v141_v56 }
 0x201   :  { %v175_v61 = vld [vmem:[#allocation3] sm:$0xff] }
 0x202   :  { %244 = vlog2.f32 %v175_v61  ;;  %121 = vst.msk [vmem:[#allocation4 + $0x8] sm:$0xff] %vm40_vm0, %v118_v59 }
 0x203   :  { %167 = vst.msk [vmem:[#allocation3 + $0x8] sm:$0xff] %vm40_vm0, %v165_v60 }
 0x208   :  { %v245_v62 = vpop.eup %244 }
 0x209   :  { %v178_v63 = vmul.f32 0.6931472, %v245_v62  ;;  %v190_v12 = vld [vmem:[#allocation4 + $0x8] sm:$0xff] }
 0x20a   :  { %v176_v1 = vld [vmem:[#allocation3 + $0x8] sm:$0xff] }
 0x20b   :  { %v181_v2 = vadd.f32 %v178_v63, %v173_v0  ;;  %246 = vlog2.f32 %v176_v1 }
 0x20d   :  { %v191_v4 = vsub.f32 %v181_v2, %v189_v3 }
 0x20f   :  { %v193_v5 = vmul.f32 %v329_v6, %v191_v4 }
 0x211   :  { %v247_v8 = vpop.eup %246  ;;  %195 = vst.msk [vmem:[%s375_s4] sm:$0xff] %vm40_vm0, %v193_v5 }
 0x212   :  { %v180_v9 = vmul.f32 0.6931472, %v247_v8 }
 0x214   :  { %v182_v11 = vadd.f32 %v180_v9, %v174_v10 }
 0x216   :  { %v192_v13 = vsub.f32 %v182_v11, %v190_v12 }
 0x218   :  { %v194_v14 = vmul.f32 %v336_v7, %v192_v13 }
 0x21a   :  { %196 = vst.msk [vmem:[%s375_s4 + $0x8] sm:$0xff] %vm40_vm0, %v194_v14 }
 0x21b   :  { %207 = vsyncpa [#allocation6], 1 }

</bundles_post_ra>
